<compile_context>
chip_gen: v5e
topology: v5e:2x2
jax: 0.10.0
libtpu: 0.0.40
codegen_flags: <defaults>
</compile_context>

<pallas_src>
import functools

import numpy as np
import jax
import jax.numpy as jnp
from jax.experimental import pallas as pl
from jax.experimental.pallas import tpu as pltpu

LANE = 128


def _layweight_kernel(s_ref, cnt_ref, w_ref):
    # s_ref:   (TB, Np)  pre-projected scores  s = proj_n[neigh] + proj_c[center]
    # cnt_ref: (TB, 1)   int32 number of valid neighbors per row
    # w_ref:   (TB, Np)  normalized attention weights (0 on padded slots)
    s = s_ref[...].astype(jnp.float32)
    cnt = cnt_ref[...]                                          # (TB, 1) int32
    tb, npad = s.shape

    # In-kernel validity mask: lane index < neighbor count (couple of free VPU ops).
    lane = jax.lax.broadcasted_iota(jnp.int32, (tb, npad), 1)
    valid = lane < cnt                                          # (TB, Np) bool

    # LeakyReLU(0.1)
    s = jnp.where(s >= 0.0, s, jnp.float32(0.1) * s)

    # Masked, numerically-stable exp-normalize (row-max subtraction is a no-op
    # mathematically but prevents overflow; padded slots end up exactly 0).
    s = jnp.where(valid, s, jnp.float32(-1e30))
    m = jnp.max(s, axis=-1, keepdims=True)                      # (TB, 1)
    e = jnp.where(valid, jnp.exp(s - m), jnp.float32(0.0))      # (TB, Np)
    denom = jnp.sum(e, axis=-1, keepdims=True)                  # (TB, 1)
    # Exact divide: weights feed downstream aggregation in the original model,
    # so we do not use the approximate reciprocal here.
    w_ref[...] = (e / denom).astype(w_ref.dtype)


def masked_leaky_expnorm(scores, counts, *, node_block=64):
    """LeakyReLU(0.1) + masked exp-normalize over dense (B, Np) tiles."""
    B, Np = scores.shape
    assert Np % LANE == 0
    assert node_block % 8 == 0 and B % node_block == 0
    counts2d = counts.reshape(B, 1).astype(jnp.int32)

    # Explicit VMEM budget: double-buffered score in/out tiles + counts tile
    # + headroom, kept comfortably under v7x's 64 MiB per-TensorCore VMEM.
    tile_bytes = node_block * Np * 4
    cnt_bytes = node_block * LANE * 4
    vmem_limit = int(min(max(2 * (2 * tile_bytes + cnt_bytes) + (4 << 20), 16 << 20),
                         48 << 20))

    cost = pl.CostEstimate(
        flops=6 * B * Np,             # where/mul/sub/sum/div per element
        transcendentals=B * Np,       # one exp per element
        bytes_accessed=2 * B * Np * 4 + B * 4)

    return pl.pallas_call(
        _layweight_kernel,
        out_shape=jax.ShapeDtypeStruct((B, Np), jnp.float32),
        grid_spec=pltpu.PrefetchScalarGridSpec(
            num_scalar_prefetch=0,
            grid=(B // node_block,),
            in_specs=[
                pl.BlockSpec((node_block, Np), lambda b: (b, 0)),
                pl.BlockSpec((node_block, 1), lambda b: (b, 0)),
            ],
            out_specs=pl.BlockSpec((node_block, Np), lambda b: (b, 0)),
        ),
        compiler_params=pltpu.CompilerParams(
            dimension_semantics=("parallel",),
            vmem_limit_bytes=vmem_limit),
        cost_estimate=cost,
    )(scores, counts2d)


@functools.partial(jax.jit, static_argnames=("num_sample", "node_block"))
def _forward_device(embed_table, u, neigh_ids, neigh_counts, center_ids,
                    num_sample, node_block):
    D = embed_table.shape[1]
    et = embed_table.astype(jnp.float32)    # bf16 tables are upcast here
    uf = u.astype(jnp.float32)

    # Projection trick: fold the feature dimension BEFORE gathering, so only
    # scalar scores are gathered per neighbor (removes the D-dim feature gather
    # and the XLA transpose pass entirely).
    proj_n = (et @ uf[:D, :]).reshape(-1)   # (V,)
    proj_c = (et @ uf[D:, :]).reshape(-1)   # (V,)
    scores = (jnp.take(proj_n, neigh_ids, axis=0)
              + jnp.take(proj_c, center_ids)[:, None])          # (B, Np) f32

    w = masked_leaky_expnorm(scores, neigh_counts, node_block=node_block)

    _, top_idx = jax.lax.top_k(w, num_sample)                   # (B, k) on device
    top_neigh = jnp.take_along_axis(neigh_ids, top_idx, axis=1) # (B, k) neighbor ids
    return w, top_idx, top_neigh


def node_lay_weight_forward(embed_table, u, nodes, neigh_lists, num_sample,
                            *, node_block=64):
    """Full NodeLayWeight.forward for a batch of (node, neighbor-set) problems.

    Returns (weights (B, Np), top-k indices (B, k), selected neighbor ids (B, k)).
    For real workloads keep node_block in 32-128 and ensure B // node_block >= 2
    so the grid splits across both TensorCores on v7x.
    """
    B = len(nodes)
    assert B == len(neigh_lists) and B > 0
    counts = [len(nb) for nb in neigh_lists]
    assert num_sample <= min(counts), "num_sample must not exceed neighbor count"
    max_n = max(counts)
    Np = max(LANE, ((max_n + LANE - 1) // LANE) * LANE)
    B_pad = ((B + node_block - 1) // node_block) * node_block

    neigh_ids = np.zeros((B_pad, Np), dtype=np.int32)
    neigh_counts = np.ones((B_pad,), dtype=np.int32)  # padded rows keep 1 dummy valid slot
    center_ids = np.zeros((B_pad,), dtype=np.int32)
    for i, (node, nbrs) in enumerate(zip(nodes, neigh_lists)):
        neigh_ids[i, :len(nbrs)] = np.asarray(nbrs, dtype=np.int32)
        neigh_counts[i] = len(nbrs)
        center_ids[i] = int(node)

    w, top_idx, top_neigh = _forward_device(
        embed_table, u,
        jnp.asarray(neigh_ids), jnp.asarray(neigh_counts), jnp.asarray(center_ids),
        num_sample, node_block)
    return w[:B], top_idx[:B], top_neigh[:B]


def top_neigh_to_sets(top_neigh):
    """The original module returned a Python set of neighbor ids; do that
    conversion only at the very end, outside the device hot path."""
    return [set(int(x) for x in row) for row in np.asarray(top_neigh)]


def _reference_weights(embed_table, u, nbrs, node):
    """Pure-JAX reference mirroring the PyTorch forward exactly."""
    nf = embed_table[np.asarray(nbrs, dtype=np.int32)]                # (n, D)
    cf = jnp.broadcast_to(embed_table[int(node)][None, :], nf.shape)  # (n, D)
    feat = jnp.concatenate([nf, cf], axis=1)                          # (n, 2D)
    s = feat @ u                                                      # (n, 1)
    s = jnp.where(s >= 0.0, s, 0.1 * s)
    w = jnp.exp(s)
    return (w / jnp.sum(w))[:, 0]


if __name__ == "__main__":
    # Small deterministic setup.
    V = 64          # number of graph nodes (embedding-table rows)
    D = 32          # feature dim per node (torch comment used 128)
    B = 16          # batch of (node, neighbor-set) problems
    num_sample = 4
    node_block = 8  # tiny demo block (grid length 2); real workloads: 32-128

    key = jax.random.PRNGKey(0)
    k_emb, k_u = jax.random.split(key)

    embed_table = jax.random.normal(k_emb, (V, D), dtype=jnp.float32)
    bound = (6.0 / (2 * D + 1)) ** 0.5                     # xavier_uniform_ on (2D, 1)
    u = jax.random.uniform(k_u, (2 * D, 1), dtype=jnp.float32,
                           minval=-bound, maxval=bound)

    # Deterministic neighbor lists (lists, not sets, so ordering is stable).
    rng = np.random.RandomState(0)
    nodes = list(range(B))
    neigh_lists = [sorted(rng.choice(V, size=5 + (i % 7), replace=False).tolist())
                   for i in range(B)]

    w, top_idx, top_neigh = node_lay_weight_forward(
        embed_table, u, nodes, neigh_lists, num_sample, node_block=node_block)
    jax.block_until_ready((w, top_idx, top_neigh))

    w_np = np.asarray(w)
    for i, (node, nbrs) in enumerate(zip(nodes, neigh_lists)):
        n = len(nbrs)
        ref = np.asarray(_reference_weights(embed_table, u, nbrs, node))
        got = w_np[i, :n]
        assert np.allclose(got, ref, rtol=1e-4, atol=1e-5), (i, got, ref)
        assert abs(float(got.sum()) - 1.0) < 1e-3
        assert np.all(w_np[i, n:] == 0.0)
        sel = set(int(x) for x in np.asarray(top_neigh[i]))
        assert len(sel) == num_sample
        assert sel.issubset(set(nbrs))

    selected_sets = top_neigh_to_sets(top_neigh)
    assert len(selected_sets) == B
    print("KERNEL_OK")
</pallas_src>

<mosaic_0001>
module attributes {stable_mosaic.version = 11 : i64} {
  func.func @_layweight_kernel(%arg0: i32, %arg1: memref<8x128xf32, #tpu.memory_space<vmem>>, %arg2: memref<8x1xi32, #tpu.memory_space<vmem>>, %arg3: memref<8x128xf32, #tpu.memory_space<vmem>>) attributes {dimension_semantics = [#tpu.dimension_semantics<parallel>], iteration_bounds = array<i64: 2>, scalar_prefetch = 0 : i64, scratch_operands = 0 : i64, tpu.core_type = #tpu.core_type<tc>, window_params = [{transform_indices = @transform_0, window_bounds = array<i64: 8, 128>}, {transform_indices = @transform_1, window_bounds = array<i64: 8, 1>}, {transform_indices = @transform_2, window_bounds = array<i64: 8, 128>}]} {
    %c0 = arith.constant 0 : index
    %c0_0 = arith.constant 0 : index
    %0 = vector.load %arg1[%c0, %c0_0] : memref<8x128xf32, #tpu.memory_space<vmem>>, vector<8x128xf32>
    %c0_1 = arith.constant 0 : index
    %c0_2 = arith.constant 0 : index
    %1 = vector.load %arg2[%c0_1, %c0_2] : memref<8x1xi32, #tpu.memory_space<vmem>>, vector<8x1xi32>
    %2 = tpu.iota {dimensions = array<i32: 1>} : vector<8x128xi32>
    %3 = vector.broadcast %1 : vector<8x1xi32> to vector<8x128xi32>
    %4 = arith.cmpi slt, %2, %3 : vector<8x128xi32>
    %cst = arith.constant 0.000000e+00 : f32
    %5 = vector.broadcast %cst : f32 to vector<8x128xf32>
    %6 = arith.cmpf oge, %0, %5 : vector<8x128xf32>
    %cst_3 = arith.constant 1.000000e-01 : f32
    %7 = vector.broadcast %cst_3 : f32 to vector<8x128xf32>
    %8 = arith.mulf %7, %0 : vector<8x128xf32>
    %9 = arith.select %6, %0, %8 : vector<8x128xi1>, vector<8x128xf32>
    %cst_4 = arith.constant -1.000000e+30 : f32
    %10 = vector.broadcast %cst_4 : f32 to vector<8x128xf32>
    %11 = arith.select %4, %9, %10 : vector<8x128xi1>, vector<8x128xf32>
    %cst_5 = arith.constant dense<0xFF800000> : vector<8xf32>
    %12 = vector.multi_reduction <maximumf>, %11, %cst_5 [1] : vector<8x128xf32> to vector<8xf32>
    %13 = vector.shape_cast %12 : vector<8xf32> to vector<8x1xf32>
    %14 = vector.broadcast %13 : vector<8x1xf32> to vector<8x128xf32>
    %15 = arith.subf %11, %14 : vector<8x128xf32>
    %16 = math.exp %15 : vector<8x128xf32>
    %cst_6 = arith.constant 0.000000e+00 : f32
    %17 = vector.broadcast %cst_6 : f32 to vector<8x128xf32>
    %18 = arith.select %4, %16, %17 : vector<8x128xi1>, vector<8x128xf32>
    %cst_7 = arith.constant dense<0.000000e+00> : vector<8xf32>
    %19 = vector.multi_reduction <add>, %18, %cst_7 [1] : vector<8x128xf32> to vector<8xf32>
    %20 = vector.shape_cast %19 : vector<8xf32> to vector<8x1xf32>
    %21 = vector.broadcast %20 : vector<8x1xf32> to vector<8x128xf32>
    %22 = arith.divf %18, %21 : vector<8x128xf32>
    %c0_8 = arith.constant 0 : index
    %c0_9 = arith.constant 0 : index
    %23 = vector.load %arg3[%c0_8, %c0_9] : memref<8x128xf32, #tpu.memory_space<vmem>>, vector<8x128xf32>
    tpu.vector_store %arg3[%c0_8, %c0_9], %22 {strides = array<i32>} : memref<8x128xf32, #tpu.memory_space<vmem>>, vector<8x128xf32>,
    return
  }
  func.func @transform_0(%arg0: i32) -> (i32, i32) {
    %c0_i32 = arith.constant 0 : i32
    %c0_i32_0 = arith.constant 0 : i32
    return %arg0, %c0_i32 : i32, i32
  }
  func.func @transform_1(%arg0: i32) -> (i32, i32) {
    %c0_i32 = arith.constant 0 : i32
    %c0_i32_0 = arith.constant 0 : i32
    return %arg0, %c0_i32 : i32, i32
  }
  func.func @transform_2(%arg0: i32) -> (i32, i32) {
    %c0_i32 = arith.constant 0 : i32
    %c0_i32_0 = arith.constant 0 : i32
    return %arg0, %c0_i32 : i32, i32
  }
}

</mosaic_0001>

<bundles_post_ra>
// kernel: _forward_device.1
= control target key start
LH: loop header
LB: loop body
LE: loop exit
PB: predicated region body
PF: predicated region fallthrough
CT: control target
= control target key end

     0   :  { %s305_s9 = smov 0   ;;  %s330_s0 = inlined_call_operand.vmem [shape: f32[16,128], index: 0, kind: input, shape index: {}]   ;;  %s331_s1 = inlined_call_operand.vmem [shape: s32[16,1], index: 1, kind: input, shape index: {}]   ;;  %s332_s2 = inlined_call_operand.vmem [shape: f32[16,128], index: 2, kind: output, shape index: {}]  }
   0x1 LB: > { %s257_s10 = sadd.s32 4294967295, %s287_s9   ;;  %p261_p0 = scmp.ge.s32.totalorder %s287_s9, 1  ;;  %s287_s9 = sphi %s305_s9, %s12_s9  }
   0x2   : > { %p120_p1 = scmp.lt.s32.totalorder %s287_s9, 3 }
   0x4   : > { %p121_p2 = pnand %p261_p0, %p120_p1 }
   0x5   : > { %p144_p3 = scmp.lt.s32.totalorder (!%p121_p2), %s257_s10, 1 }
   0x6   : > { %124 = sbr.rel (%p121_p2) target bundleno = 396 (0x18c), region = 28 }
   0xb   : > { %v289_v0 = vmov 0   ;;  %s334_s10 = smov (!%p144_p3, %s257_s10), 1  ;;  %v158_v3 = vlaneseq }
   0xc   : > { %276 = vset.pattern.permute.xlu0 %v289_v0  ;;  %s313_s11 = sshll.u32 %s334_s10, 3 }
   0xd   : > { %s151_s14 = scalar_lea.vmem %s331_s1, %s313_s11  ;;  %s147_s17 = scalar_lea.vmem %s330_s0, %s313_s11  ;;  %v159_v5 = vand.u32 127, %v158_v3 }
   0xe   : > { %v157_v1 = vld [vmem:[%s151_s14] sm:$0xff]  ;;  %s155_s20 = scalar_lea.vmem %s332_s2, %s313_s11 }
   0xf   : > { %161 = vperm.xlu0 %276, %v157_v1   ;;  %v156_v2 = vld [vmem:[%s147_s17] sm:$0xff] }
  0x10   : > { %v165_v4 = vmul.f32 0.1, %v156_v2  ;;  %vm164_vm0 = vcmp.ge.f32.partialorder %v156_v2, 0.0 }
  0x12   : > { %v166_v6 = vsel %vm164_vm0, %v156_v2, %v165_v4 }
  0x81   : > { %v162_v7 = vpop.permute.xlu0 %161 }
  0x82   : > { %vm163_vm1 = vcmp.lt.s32.totalorder %v159_v5, %v162_v7 }
  0x83   : > { %v167_v8 = vsel %vm163_vm1, %v166_v6, -1e+30 }
  0x84   : > { %168 = vmax.xlane.f32.xlu0 %v167_v8 }
  0xf7   : > { %v169_v9 = vpop.xlane.xlu0 %168 }
  0xf8   : > { %v170_v10 = vsub.f32 %v167_v8, %v169_v9 }
  0xfa   : > { %v171_v11 = vmul.f32 1.442695, %v170_v10 }
  0xfc   : > { %277 = vpow2.f32 %v171_v11 }
 0x102   : > { %v278_v12 = vpop.eup %277 }
 0x103   : > { %v173_v13 = vsel %vm163_vm1, %v278_v12, 0.0 }
 0x104   : > { %174 = vadd.xlane.f32.xlu1 %v173_v13 }
 0x177   : > { %v175_v14 = vpop.xlane.xlu1 %174 }
 0x178   : > { %279 = vrcp.f32 %v175_v14  ;;  %v187_v18 = vand.u32 2147483648, %v175_v14  ;;  %v185_v20 = vand.u32 2147483647, %v175_v14  ;;  %vm181_vm3 = vweird.f32 %v175_v14 }
 0x17a   : > { %v188_v22 = vor.u32 1.1754944e-38, %v187_v18  ;;  %vm186_vm5 = vcmp.eq.f32.partialorder %v185_v20, 8.507059e+37 }
 0x17e   : > { %v280_v15 = vpop.eup %279 }
 0x17f   : > { %v177_v16 = vmul.f32 %v280_v15, %v175_v14  ;;  %vm182_vm2 = vweird.f32 %v280_v15 }
 0x180   : > { %vm183_vm4 = vmor %vm181_vm3, %vm182_vm2 }
 0x181   : > { %v178_v17 = vsub.f32 1.0, %v177_v16 }
 0x183   : > { %v179_v19 = vmul.f32 %v280_v15, %v178_v17 }
 0x185   : > { %v180_v21 = vadd.f32 %v280_v15, %v179_v19 }
 0x187   : > { %v184_v23 = vsel %vm183_vm4, %v280_v15, %v180_v21 }
 0x188   : > { %v189_v24 = vsel %vm186_vm5, %v188_v22, %v184_v23 }
 0x189   : > { %v190_v25 = vmul.f32 %v189_v24, %v173_v13 }
 0x18b   : > { %191 = vst [vmem:[%s155_s20] sm:$0xff] %v190_v25 }
 0x18c PF: > { %s12_s9 = sadd.s32 1, %s287_s9  }
 0x18d   : > { %p9_p4 = scmp.ge.s32.totalorder %s12_s9, 4  }
 0x18f   :  { %11 = sbr.rel (!%p9_p4) target bundleno = 1 (0x1), region = 61 }

</bundles_post_ra>
